<compile_context>
chip_gen: v5e
topology: v5e:2x2
jax: 0.10.0
libtpu: 0.0.40
codegen_flags: <defaults>
</compile_context>

<pallas_src>
import jax
import jax.numpy as jnp
from jax.experimental import pallas as pl
from jax.experimental.pallas import tpu as pltpu


def _gelu_tanh(x):
    # GELU with the tanh approximation, matching nn.GELU(approximate='tanh').
    c = 0.7978845608028654  # sqrt(2/pi)
    return 0.5 * x * (1.0 + jnp.tanh(c * (x + 0.044715 * x * x * x)))


def _round_up(a, b):
    return (a + b - 1) // b * b


# ------------------------------ kernels ------------------------------------

def _mlp_kernel_acc(x_ref, w1_ref, w2_ref, o_ref, acc_ref):
    # grid = (row_blocks, out_blocks, hidden_blocks); hidden axis last ("arbitrary").
    # x_ref  : (tm, in_f)      bf16
    # w1_ref : (in_f, th)      bf16   (pre-transposed: x @ w1)
    # w2_ref : (th, out_blk)   bf16   (pre-transposed: g @ w2)
    # o_ref  : (tm, out_blk)
    # acc_ref: (tm, out_blk)   f32 accumulator across the hidden axis
    k = pl.program_id(2)

    @pl.when(k == 0)
    def _():
        acc_ref[...] = jnp.zeros_like(acc_ref)

    h = jnp.dot(x_ref[...], w1_ref[...], preferred_element_type=jnp.float32)
    g = _gelu_tanh(h)  # f32 elementwise (no bf16 VPU/EUP on v5e)
    acc_ref[...] += jnp.dot(g.astype(jnp.bfloat16), w2_ref[...],
                            preferred_element_type=jnp.float32)

    @pl.when(k == pl.num_programs(2) - 1)
    def _():
        o_ref[...] = acc_ref[...].astype(o_ref.dtype)


def _mlp_kernel_noacc(x_ref, w1_ref, w2_ref, o_ref):
    # Hidden dim fully resident: no accumulator scratch, no zero-init / RMW.
    h = jnp.dot(x_ref[...], w1_ref[...], preferred_element_type=jnp.float32)
    g = _gelu_tanh(h)
    o_ref[...] = jnp.dot(g.astype(jnp.bfloat16), w2_ref[...],
                         preferred_element_type=jnp.float32).astype(o_ref.dtype)


# --------------------------- planning helpers --------------------------------

def _vmem_budget_and_limit():
    """Generation-aware VMEM budget (for tile planning) and vmem_limit cap."""
    try:
        phys = int(getattr(pltpu.get_tpu_info(), "vmem_capacity_bytes", 64 << 20))
    except Exception:  # query unavailable -> be conservative (v7x-sized)
        phys = 64 << 20
    limit_cap = phys - (8 << 20)                  # headroom for Mosaic scratch
    budget = min(phys - (16 << 20), 100 << 20)    # ~48 MiB on v7x, ~100 MiB on v5e/v6e
    return budget, limit_cap


def _pick_tm(M, want_tm):
    m8 = _round_up(M, 8)
    if m8 <= want_tm:
        return m8
    # Large M: split into near-equal row blocks, 256-aligned for the MXU.
    n_blocks = -(-m8 // want_tm)
    return _round_up(-(-m8 // n_blocks), 256)


def _plan_tiles(M, in_f, hidden, out_f, out_bytes, want_tm, budget):
    """Returns (tm, th, hidden_p, out_p, vmem_need_bytes)."""
    out_p = _round_up(out_f, 128)
    tm = _pick_tm(M, want_tm)

    def need(tm_, th_, n_k_):
        b = (2 * tm_ * in_f * 2           # x tile  (bf16), double-buffered
             + 2 * in_f * th_ * 2         # w1 tile (bf16), double-buffered
             + 2 * th_ * out_p * 2        # w2 tile (bf16), double-buffered
             + 2 * tm_ * out_p * out_bytes  # output tile, double-buffered
             + 2 * tm_ * th_ * 4)         # f32 h / gelu intermediates headroom
        if n_k_ > 1:
            b += tm_ * out_p * 4          # f32 accumulator scratch
        return b

    while True:
        # 1) full hidden residency: single k step, no accumulator, no hidden padding.
        n1 = need(tm, hidden, 1)
        if n1 <= budget:
            return tm, hidden, hidden, out_p, n1
        # 2) stream the hidden dim in multiples of 256 (hidden zero-padded to th*n_k).
        max_th = _round_up(hidden, 256)
        for th in range(max_th, 255, -256):
            hidden_p = _round_up(hidden, th)
            n_k = hidden_p // th
            nb = need(tm, th, n_k)
            if nb <= budget:
                return tm, th, hidden_p, out_p, nb
        # 3) nothing fits: shrink the row tile and retry.
        if tm > 8:
            tm = max(8, _round_up(tm // 2, 8))
            continue
        # TODO(synk): also tile in_features for extreme feature widths.
        th = 256
        hidden_p = _round_up(hidden, th)
        return tm, th, hidden_p, out_p, need(tm, th, hidden_p // th)


# ------------------------------ public API -----------------------------------

def prepare_mlp_params(w1_pt, w2_pt):
    """One-time (parameter-load-time) conversion from PyTorch nn.Linear layout.

    w1_pt: [hidden, in_f]   ->  [in_f, hidden]  bf16
    w2_pt: [out_f, hidden]  ->  [hidden, out_f] bf16
    """
    w1_t = jnp.asarray(w1_pt).T.astype(jnp.bfloat16)
    w2_t = jnp.asarray(w2_pt).T.astype(jnp.bfloat16)
    return w1_t, w2_t


def mlp_pallas(x, w1_t, w2_t, *, want_tm=1024):
    """gelu_tanh(x @ w1) @ w2  -- nn.Linear(bias=False) forward semantics.

    x   : [..., in_features]       any float dtype (cast to bf16 for the MXU)
    w1_t: [in_features, hidden]    bf16, pre-transposed (prepare_mlp_params)
    w2_t: [hidden, out_features]   bf16, pre-transposed
    """
    in_f, hidden = w1_t.shape
    hidden2, out_f = w2_t.shape
    assert hidden == hidden2 and x.shape[-1] == in_f, "weight/input shapes inconsistent"

    lead = x.shape[:-1]
    out_dtype = x.dtype
    out_bytes = jnp.dtype(out_dtype).itemsize

    x2 = x.reshape(-1, in_f).astype(jnp.bfloat16)  # bf16 once, in the wrapper
    M = x2.shape[0]

    budget, limit_cap = _vmem_budget_and_limit()
    tm, th, hidden_p, out_p, vmem_need = _plan_tiles(
        M, in_f, hidden, out_f, out_bytes, want_tm, budget)

    # Pad rows so the row tile divides.
    m_pad = _round_up(M, tm)
    if m_pad != M:
        x2 = jnp.pad(x2, ((0, m_pad - M), (0, 0)))
    n_rows = m_pad // tm
    n_k = hidden_p // th

    # Megacore: with a single row block (decode-sized M), split out_features into a
    # second "parallel" axis so both v7x TensorCores get work.
    n_out = 2 if (n_rows == 1 and out_f >= 256) else 1
    out_p = _round_up(out_f, 128 * n_out)
    out_blk = out_p // n_out

    # Zero-pad weights; hidden padding is mathematically exact (gelu(0) * 0-rows = 0).
    if hidden_p != hidden:
        w1_t = jnp.pad(w1_t, ((0, 0), (0, hidden_p - hidden)))
        w2_t = jnp.pad(w2_t, ((0, hidden_p - hidden), (0, 0)))
    if out_p != out_f:
        w2_t = jnp.pad(w2_t, ((0, 0), (0, out_p - out_f)))

    grid = (n_rows, n_out, n_k)
    if n_k > 1:
        kernel = _mlp_kernel_acc
        scratch = [pltpu.VMEM((tm, out_blk), jnp.float32)]
    else:
        kernel = _mlp_kernel_noacc
        scratch = []

    vmem_limit = int(min(max(int(vmem_need * 1.25) + (2 << 20), 32 << 20), limit_cap))

    cost = pl.CostEstimate(
        flops=2 * M * hidden * (in_f + out_f),
        transcendentals=M * hidden,
        bytes_accessed=(M * in_f * 2 + in_f * hidden * 2 + hidden * out_f * 2
                        + M * out_f * out_bytes),
    )

    out = pl.pallas_call(
        kernel,
        out_shape=jax.ShapeDtypeStruct((m_pad, out_p), out_dtype),
        grid_spec=pltpu.PrefetchScalarGridSpec(
            num_scalar_prefetch=0,
            grid=grid,
            in_specs=[
                pl.BlockSpec((tm, in_f), lambda i, j, k: (i, 0)),      # x rows
                pl.BlockSpec((in_f, th), lambda i, j, k: (0, k)),      # w1 hidden-chunk
                pl.BlockSpec((th, out_blk), lambda i, j, k: (k, j)),   # w2 hidden-chunk
            ],
            out_specs=pl.BlockSpec((tm, out_blk), lambda i, j, k: (i, j)),
            scratch_shapes=scratch,
        ),
        compiler_params=pltpu.CompilerParams(
            dimension_semantics=("parallel", "parallel", "arbitrary"),
            vmem_limit_bytes=vmem_limit,
        ),
        cost_estimate=cost,
    )(x2, w1_t, w2_t)

    if m_pad != M or out_p != out_f:
        out = out[:M, :out_f]
    return out.reshape(*lead, out_f)


# ------------------------------ example / test -------------------------------

if __name__ == "__main__":
    # Small shapes: batch=2, seq=8, in_features=32, hidden=64, out_features=32
    batch, seq = 2, 8
    in_features, hidden_features, out_features = 32, 64, 32

    key = jax.random.PRNGKey(0)
    kx, k1, k2 = jax.random.split(key, 3)

    x = jax.random.normal(kx, (batch, seq, in_features), dtype=jnp.float32)
    # nn.Linear weights in PyTorch [out, in] layout (as they'd come from the module).
    w1_pt = jax.random.normal(k1, (hidden_features, in_features), jnp.float32) * 0.05
    w2_pt = jax.random.normal(k2, (out_features, hidden_features), jnp.float32) * 0.05

    # One-time parameter preparation (transpose + bf16 cast).
    w1_t, w2_t = prepare_mlp_params(w1_pt, w2_pt)

    out = mlp_pallas(x, w1_t, w2_t)
    jax.block_until_ready(out)

    # Reference in plain JAX with matching bf16 operands / f32 accumulation.
    x2d = x.reshape(batch * seq, in_features).astype(jnp.bfloat16)
    h_ref = jnp.dot(x2d, w1_t, preferred_element_type=jnp.float32)
    g_ref = _gelu_tanh(h_ref)
    ref = jnp.dot(g_ref.astype(jnp.bfloat16), w2_t,
                  preferred_element_type=jnp.float32).astype(x.dtype)
    ref = ref.reshape(batch, seq, out_features)

    assert out.shape == (batch, seq, out_features)
    assert jnp.allclose(out, ref, atol=1e-2, rtol=1e-2), "mismatch vs reference"

    print("KERNEL_OK")
</pallas_src>

<mosaic_0001>
module attributes {stable_mosaic.version = 11 : i64} {
  func.func @_mlp_kernel_noacc(%arg0: i32, %arg1: i32, %arg2: i32, %arg3: memref<16x32xbf16, #tpu.memory_space<vmem>>, %arg4: memref<32x64xbf16, #tpu.memory_space<vmem>>, %arg5: memref<64x128xbf16, #tpu.memory_space<vmem>>, %arg6: memref<16x128xf32, #tpu.memory_space<vmem>>) attributes {dimension_semantics = [#tpu.dimension_semantics<parallel>, #tpu.dimension_semantics<parallel>, #tpu.dimension_semantics<arbitrary>], iteration_bounds = array<i64: 1, 1, 1>, scalar_prefetch = 0 : i64, scratch_operands = 0 : i64, tpu.core_type = #tpu.core_type<tc>, window_params = [{transform_indices = @transform_0, window_bounds = array<i64: 16, 32>}, {transform_indices = @transform_1, window_bounds = array<i64: 32, 64>}, {transform_indices = @transform_2, window_bounds = array<i64: 64, 128>}, {transform_indices = @transform_3, window_bounds = array<i64: 16, 128>}]} {
    %c0 = arith.constant 0 : index
    %c0_0 = arith.constant 0 : index
    %0 = vector.load %arg3[%c0, %c0_0] : memref<16x32xbf16, #tpu.memory_space<vmem>>, vector<16x32xbf16>
    %c0_1 = arith.constant 0 : index
    %c0_2 = arith.constant 0 : index
    %1 = vector.load %arg4[%c0_1, %c0_2] : memref<32x64xbf16, #tpu.memory_space<vmem>>, vector<32x64xbf16>
    %cst = arith.constant dense<0.000000e+00> : vector<16x64xf32>
    %2 = tpu.matmul %0, %1, %cst {dimension_numbers = #tpu.dot_dimension_numbers<[1], [0], [0], [1], [0, 0, 1, 1], [], []>} : vector<16x32xbf16>, vector<32x64xbf16>, vector<16x64xf32> -> vector<16x64xf32>
    %cst_3 = arith.constant 5.000000e-01 : f32
    %3 = vector.broadcast %cst_3 : f32 to vector<16x64xf32>
    %4 = arith.mulf %3, %2 : vector<16x64xf32>
    %cst_4 = arith.constant 4.471500e-02 : f32
    %5 = vector.broadcast %cst_4 : f32 to vector<16x64xf32>
    %6 = arith.mulf %5, %2 : vector<16x64xf32>
    %7 = arith.mulf %6, %2 : vector<16x64xf32>
    %8 = arith.mulf %7, %2 : vector<16x64xf32>
    %9 = arith.addf %2, %8 : vector<16x64xf32>
    %cst_5 = arith.constant 0.797884583 : f32
    %10 = vector.broadcast %cst_5 : f32 to vector<16x64xf32>
    %11 = arith.mulf %10, %9 : vector<16x64xf32>
    %12 = math.tanh %11 : vector<16x64xf32>
    %cst_6 = arith.constant 1.000000e+00 : f32
    %13 = vector.broadcast %cst_6 : f32 to vector<16x64xf32>
    %14 = arith.addf %13, %12 : vector<16x64xf32>
    %15 = arith.mulf %4, %14 : vector<16x64xf32>
    %16 = arith.truncf %15 : vector<16x64xf32> to vector<16x64xbf16>
    %c0_7 = arith.constant 0 : index
    %c0_8 = arith.constant 0 : index
    %17 = vector.load %arg5[%c0_7, %c0_8] : memref<64x128xbf16, #tpu.memory_space<vmem>>, vector<64x128xbf16>
    %cst_9 = arith.constant dense<0.000000e+00> : vector<16x128xf32>
    %18 = tpu.matmul %16, %17, %cst_9 {dimension_numbers = #tpu.dot_dimension_numbers<[1], [0], [0], [1], [0, 0, 1, 1], [], []>} : vector<16x64xbf16>, vector<64x128xbf16>, vector<16x128xf32> -> vector<16x128xf32>
    %c0_10 = arith.constant 0 : index
    %c0_11 = arith.constant 0 : index
    %19 = vector.load %arg6[%c0_10, %c0_11] : memref<16x128xf32, #tpu.memory_space<vmem>>, vector<16x128xf32>
    tpu.vector_store %arg6[%c0_10, %c0_11], %18 {strides = array<i32>} : memref<16x128xf32, #tpu.memory_space<vmem>>, vector<16x128xf32>,
    return
  }
  func.func @transform_0(%arg0: i32, %arg1: i32, %arg2: i32) -> (i32, i32) {
    %c0_i32 = arith.constant 0 : i32
    %c0_i32_0 = arith.constant 0 : i32
    return %arg0, %c0_i32 : i32, i32
  }
  func.func @transform_1(%arg0: i32, %arg1: i32, %arg2: i32) -> (i32, i32) {
    %c0_i32 = arith.constant 0 : i32
    %c0_i32_0 = arith.constant 0 : i32
    return %c0_i32, %arg2 : i32, i32
  }
  func.func @transform_2(%arg0: i32, %arg1: i32, %arg2: i32) -> (i32, i32) {
    %c0_i32 = arith.constant 0 : i32
    return %arg2, %arg1 : i32, i32
  }
  func.func @transform_3(%arg0: i32, %arg1: i32, %arg2: i32) -> (i32, i32) {
    %c0_i32 = arith.constant 0 : i32
    return %arg0, %arg1 : i32, i32
  }
}

</mosaic_0001>

<bundles_post_ra>
// kernel: tpu_custom_call.1
= control target key start
LH: loop header
LB: loop body
LE: loop exit
PB: predicated region body
PF: predicated region fallthrough
CT: control target
= control target key end

     0   :  { %8 = vsyncpa [#allocation3], 0  ;;  %s386_s0 = inlined_call_operand.hbm [shape: bf16[16,32], index: 0, kind: input, shape index: {}]   ;;  %s387_s1 = inlined_call_operand.hbm [shape: bf16[32,64], index: 1, kind: input, shape index: {}]   ;;  %s388_s2 = inlined_call_operand.hbm [shape: bf16[64,128], index: 2, kind: input, shape index: {}]   ;;  %s389_s3 = inlined_call_operand.hbm [shape: f32[16,128], index: 3, kind: output, shape index: {}]  }
   0x1   :  { %9 = vsyncpa [#allocation6], 0 }
   0x2   :  { %10 = vsyncpa [#allocation4], 0  ;;  %s28_s14 = sshll.u32 %s387_s1, 4  ;;  %s346_s15 = smov [#allocation5]   ;;  %s29_s14 = int_to_ptr.hbm [resolvable:$true] %s28_s14 }
   0x3   :  { %s30_s16 = sshll.u32 %s346_s15, 4  ;;  %s15_s19 = sshll.u32 %s386_s0, 4  ;;  %s31_s16 = int_to_ptr.vmem [resolvable:$true] %s30_s16  ;;  %s16_s19 = int_to_ptr.hbm [resolvable:$true] %s15_s19 }
   0x4   :  { %s347_s20 = smov 64   ;;  %s348_s21 = smov 4  }
   0x5   :  { %36 = dma.hbm_to_vmem [thread:$0]  %s29_s14, 256, %s31_s16, [#allocation6], %s347_s20, %s347_s20, %s348_s21  }
   0x6   :  { %s349_s22 = smov [#allocation2]   ;;  %s41_s26 = sshll.u32 %s388_s2, 4  ;;  %s42_s26 = int_to_ptr.hbm [resolvable:$true] %s41_s26 }
   0x7   :  { %s17_s23 = sshll.u32 %s349_s22, 4  ;;  %s350_s1 = smov [#allocation7]   ;;  %s18_s23 = int_to_ptr.vmem [resolvable:$true] %s17_s23 }
   0x8   :  { %23 = dma.hbm_to_vmem [thread:$0]  %s16_s19, 128, %s18_s23, [#allocation3], %s347_s20, %s347_s20, %s348_s21  }
   0x9   :  { %s43_s27 = sshll.u32 %s350_s1, 4  ;;  %s44_s27 = int_to_ptr.vmem [resolvable:$true] %s43_s27 }
   0xa   :  { %49 = dma.hbm_to_vmem [thread:$0]  %s42_s26, 512, %s44_s27, [#allocation6], %s347_s20, %s347_s20, %s348_s21  }
   0xb   :  { %340 = dma.done.wait [#allocation3], 128  }
   0xc   :  { %341 = vsyncadd [#allocation3], 4294967168 }
   0xd   :  { %342 = dma.done.wait [#allocation6], 768  }
   0xe   :  { %343 = vsyncadd [#allocation6], 4294966528  ;;  %v227_v0 = vld [vmem:[#allocation5 + $0x8] sm:$0xff]  ;;  %v226_v1 = vld [vmem:[#allocation5] sm:$0xff]  ;;  %vm86_vm0 = vcmask 261120   ;;  %vm155_vm1 = vcmask 523264  }
   0xf   :  { %96 = vmatpush.bf16.msra.mxu0 %v227_v0  ;;  %v225_v2 = vld [vmem:[#allocation2] sm:$0xff]  ;;  %v231_v3 = vld [vmem:[#allocation7 + $0x18] sm:$0xff]  ;;  %v230_v4 = vld [vmem:[#allocation7 + $0x10] sm:$0xff]  ;;  %s351_s0 = smov [#allocation8]   ;;  %s181_s30 = sshll.u32 %s389_s3, 4  ;;  %s182_s30 = int_to_ptr.hbm [resolvable:$true] %s181_s30 }
  0x10   :  { %163 = vmatpush.bf16.msra.mxu1 %v231_v3  ;;  %v229_v5 = vld [vmem:[#allocation7 + $0x8] sm:$0xff]  ;;  %v228_v6 = vld [vmem:[#allocation7] sm:$0xff]  ;;  %s179_s2 = sshll.u32 %s351_s0, 4  ;;  %s352_s4 = smov 128   ;;  %s180_s2 = int_to_ptr.vmem [resolvable:$true] %s179_s2 }
  0x11   :  { %s353_s5 = smov 8  }
  0x13   :  { %97 = vmatpush.bf16.msra.mxu0 %v226_v1 }
  0x14   :  { %164 = vmatpush.bf16.msra.mxu1 %v230_v4 }
  0x16   :  { %207 = vmatmul.msk.bf16.vlgmr.msra.gmra.mxu0 %vm86_vm0, %v225_v2 }
  0x18   :  { %165 = vmatpush.bf16.msra.mxu1 %v229_v5 }
  0x1c   :  { %166 = vmatpush.bf16.msra.mxu1 %v228_v6 }
  0x93   :  { %v99_v7 = vpop.f32.mrf.mxu0 }
  0x94   :  { %v106_v8 = vmul.f32 0.044715, %v99_v7  ;;  %v104_v23 = vmul.f32 0.5, %v99_v7 }
  0x96   :  { %v108_v9 = vmul.f32 %v106_v8, %v99_v7 }
  0x98   :  { %v110_v10 = vmul.f32 %v108_v9, %v99_v7 }
  0x9a   :  { %v112_v11 = vadd.f32 %v110_v10, %v99_v7 }
  0x9b   :  { %v101_v12 = vpop.f32.mrf.mxu0 }
  0x9c   :  { %v107_v13 = vmul.f32 0.044715, %v101_v12  ;;  %v114_v14 = vmul.f32 0.7978846, %v112_v11  ;;  %v105_v22 = vmul.f32 0.5, %v101_v12 }
  0x9e   :  { %v109_v15 = vmul.f32 %v107_v13, %v101_v12  ;;  %240 = vtanh.f32 %v114_v14 }
  0xa0   :  { %v111_v16 = vmul.f32 %v109_v15, %v101_v12 }
  0xa2   :  { %v113_v17 = vadd.f32 %v111_v16, %v101_v12 }
  0xa4   :  { %v115_v18 = vmul.f32 0.7978846, %v113_v17  ;;  %v241_v19 = vpop.eup %240 }
  0xa5   :  { %v118_v20 = vadd.f32 1.0, %v241_v19 }
  0xa6   :  { %242 = vtanh.f32 %v115_v18 }
  0xa7   :  { %v120_v25 = vmul.f32 %v118_v20, %v104_v23 }
  0xac   :  { %v243_v21 = vpop.eup %242 }
  0xad   :  { %v119_v24 = vadd.f32 1.0, %v243_v21 }
  0xaf   :  { %v121_v26 = vmul.f32 %v119_v24, %v105_v22 }
  0xb1   :  { %v122_v27 = vpack.c.bf16 %v121_v26, %v120_v25 }
  0xb3   :  { %224 = vmatmul.msk.bf16.vlgmr.msra.gmra.mxu1 %vm155_vm1, %v122_v27 }
 0x130   :  { %v168_v28 = vpop.f32.mrf.mxu1 }
 0x131   :  { %173 = vst [vmem:[#allocation8] sm:$0xff] %v168_v28 }
 0x138   :  { %v170_v29 = vpop.f32.mrf.mxu1 }
 0x139   :  { %174 = vst [vmem:[#allocation8 + $0x8] sm:$0xff] %v170_v29 }
 0x13a   :  { %187 = dma.vmem_to_hbm [thread:$0]  %s180_s2, 256, %s182_s30, [#allocation4], %s352_s4, %s352_s4, %s353_s5  }
 0x13b   :  { %344 = dma.done.wait [#allocation4], 256  }
 0x13c   :  { %345 = vsyncadd [#allocation4], 4294967040 }
 0x13d   :  { %192 = vsyncpa [#allocation3], 1 }
 0x13e   :  { %193 = vsyncpa [#allocation6], 1 }
 0x13f   :  { %194 = vsyncpa [#allocation4], 1 }

</bundles_post_ra>
